<compile_context>
chip_gen: v5e
topology: v5e:2x2
jax: 0.10.0
libtpu: 0.0.40
codegen_flags: <defaults>
</compile_context>

<pallas_src>
import functools

import jax
import jax.numpy as jnp
from jax.experimental import pallas as pl
from jax.experimental.pallas import tpu as pltpu

LANE = 128          # pad all feature dims to a multiple of the 128-lane vreg width
SUBLANE_BF16 = 16   # bf16 packs 16 rows per vreg -> batch tiles in multiples of 16


def _round_up(n, m):
    return ((n + m - 1) // m) * m


def _cdiv(a, b):
    return (a + b - 1) // b


def _pad_to(x, shape):
    return jnp.pad(x, [(0, s - d) for d, s in zip(x.shape, shape)])


def _layer_dims(num_layers, input_size, out_size):
    if num_layers == 1:
        return [input_size, input_size]
    if num_layers == 3:
        return [input_size, input_size * 2, out_size]
    if num_layers == 5:
        return [input_size, input_size * 2, input_size * 4,
                input_size * 2, out_size]
    if num_layers == 7:
        return [input_size, input_size * 2, input_size * 4, input_size * 8,
                input_size * 4, input_size * 2, out_size]
    raise ValueError("num_layers must be one of {1, 3, 5, 7}")


def init_params(key, num_layers, input_size, out_size=2):
    """PyTorch-default Linear init. Returns [(w_t [in,out] f32, b [out] f32), ...]."""
    dims = _layer_dims(num_layers, input_size, out_size)
    params = []
    for fin, fout in zip(dims[:-1], dims[1:]):
        key, kw, kb = jax.random.split(key, 3)
        bound = 1.0 / (fin ** 0.5)
        w = jax.random.uniform(kw, (fout, fin), jnp.float32, -bound, bound)
        b = jax.random.uniform(kb, (fout,), jnp.float32, -bound, bound)
        params.append((w.T, b))          # store transposed: y = x @ w_t + b
    return params


def pack_params_for_kernel(params):
    """Zero-pad features to 128 lanes; weights -> bf16 (MXU), bias -> f32 [1, Fp]."""
    packed = []
    for w_t, b in params:
        fin, fout = w_t.shape
        fin_p, fout_p = _round_up(fin, LANE), _round_up(fout, LANE)
        w_p = _pad_to(w_t, (fin_p, fout_p)).astype(jnp.bfloat16)
        b_p = _pad_to(b.reshape(1, fout), (1, fout_p)).astype(jnp.float32)
        packed.append((w_p, b_p))
    return packed


def _vmem_budget_bytes(kernel_params, bt, fin_p, fout_last_p):
    """Resident (single-buffered) weights/biases + double-buffered tile I/O
    + live intermediates, with ~30% headroom. Clamped to a safe range."""
    wb = sum(int(w.size) * w.dtype.itemsize + int(b.size) * b.dtype.itemsize
             for w, b in kernel_params)
    io = 2 * bt * fin_p * 2 + 2 * bt * fout_last_p * 4       # x (bf16) / out (f32) tiles
    widest = max(int(w.shape[1]) for w, _ in kernel_params)
    acts = 2 * bt * widest * (4 + 2)                          # f32 + bf16 intermediates
    total = int((wb + io + acts) * 1.3) + (1 << 20)
    return max(32 << 20, min(total, 100 << 20))


def _make_fused_kernel(n_layers):
    def kernel(x_ref, *refs):
        o_ref = refs[-1]
        wb = refs[:-1]                                        # (w0, b0, w1, b1, ...)
        act = x_ref[...]                                      # bf16 [bt, Fin_p]
        for l in range(n_layers):                             # unrolled at trace time
            w = wb[2 * l][...]                                # bf16 [Fin_p, Fout_p]
            b = wb[2 * l + 1][...]                            # f32  [1, Fout_p]
            y = jnp.dot(act, w, preferred_element_type=jnp.float32)   # MXU, f32 acc
            y = jnp.maximum(y + b, 0.0)                       # ReLU after every Linear
            if l < n_layers - 1:
                act = y.astype(jnp.bfloat16)                  # bf16 into next matmul
            else:
                o_ref[...] = y.astype(o_ref.dtype)            # lane-dense final store
    return kernel


@functools.partial(jax.jit, static_argnames=("out_size", "batch_tile"))
def torch_network_forward(x, kernel_params, out_size, batch_tile=256):
    """Fused forward pass: one pallas_call for the whole Linear+ReLU stack."""
    B, _ = x.shape
    fin_p = kernel_params[0][0].shape[0]
    fout_last_p = kernel_params[-1][0].shape[1]
    n_layers = len(kernel_params)

    # Batch tile: multiple of 16 (bf16 sublane packing); aim for >= 2 grid tiles
    # when B permits (v7x dual-TC sharding), capped at batch_tile.
    b16 = _round_up(B, SUBLANE_BF16)
    if b16 >= 2 * SUBLANE_BF16:
        bt = min(batch_tile, _round_up(_cdiv(b16, 2), SUBLANE_BF16))
    else:
        bt = SUBLANE_BF16
    b_pad = _round_up(B, bt)

    x_p = _pad_to(x, (b_pad, fin_p)).astype(jnp.bfloat16)

    inputs = [x_p]
    in_specs = [pl.BlockSpec((bt, fin_p), lambda i: (i, 0))]
    for w_p, b_p in kernel_params:
        inputs += [w_p, b_p]
        in_specs += [
            # Constant index_map across the grid -> weights are resident; a
            # single buffer is enough (default double-buffering would 2x VMEM).
            pl.BlockSpec(w_p.shape, lambda i: (0, 0),
                         pipeline_mode=pl.Buffered(1)),
            pl.BlockSpec(b_p.shape, lambda i: (0, 0),
                         pipeline_mode=pl.Buffered(1)),
        ]

    vmem_limit = _vmem_budget_bytes(kernel_params, bt, fin_p, fout_last_p)

    out_p = pl.pallas_call(
        _make_fused_kernel(n_layers),
        out_shape=jax.ShapeDtypeStruct((b_pad, fout_last_p), jnp.float32),
        grid=(b_pad // bt,),
        in_specs=in_specs,
        out_specs=pl.BlockSpec((bt, fout_last_p), lambda i: (i, 0)),
        compiler_params=pltpu.CompilerParams(
            # batch tiles are independent -> shard across v7x's 2 TensorCores
            dimension_semantics=("parallel",),
            vmem_limit_bytes=vmem_limit,
        ),
    )(*inputs)

    return out_p[:B, :out_size]   # strip batch / lane padding


def reference_forward(x, params):
    """Plain-JAX reference mirroring the kernel's bf16-matmul / f32-epilogue math."""
    act = x.astype(jnp.bfloat16)
    for l, (w_t, b) in enumerate(params):
        y = jnp.dot(act, w_t.astype(jnp.bfloat16),
                    preferred_element_type=jnp.float32)
        y = jnp.maximum(y + b.astype(jnp.float32), 0.0)
        act = y.astype(jnp.bfloat16) if l < len(params) - 1 else y
    return act


if __name__ == "__main__":
    num_layers = 3
    input_size = 32
    out_size = 2
    batch = 8

    key = jax.random.PRNGKey(0)
    key, kx = jax.random.split(key)
    x = jax.random.normal(kx, (batch, input_size), jnp.float32)

    params = init_params(key, num_layers, input_size, out_size)
    kernel_params = pack_params_for_kernel(params)

    out = torch_network_forward(x, kernel_params, out_size=out_size)
    out = jax.block_until_ready(out)

    assert out.shape == (batch, out_size), out.shape

    # Primary check: reference with the same bf16-quantized matmul math.
    ref = reference_forward(x, params)
    assert jnp.allclose(out, ref, atol=2e-2, rtol=2e-2), "mismatch vs bf16 reference"

    # Loose sanity check against pure-f32 PyTorch-equivalent math (the spec
    # applies ReLU after the final Linear as well, so the kernel does too).
    ref_f32 = x
    for w_t, b in params:
        ref_f32 = jnp.maximum(ref_f32 @ w_t + b, 0.0)
    assert jnp.allclose(out, ref_f32, atol=5e-2, rtol=5e-2), "mismatch vs f32 reference"

    print("KERNEL_OK")
</pallas_src>

<mosaic_0001>
module attributes {stable_mosaic.version = 11 : i64} {
  func.func @kernel(%arg0: i32, %arg1: memref<16x128xbf16, #tpu.memory_space<vmem>>, %arg2: memref<128x128xbf16, #tpu.memory_space<vmem>>, %arg3: memref<1x128xf32, #tpu.memory_space<vmem>>, %arg4: memref<128x128xbf16, #tpu.memory_space<vmem>>, %arg5: memref<1x128xf32, #tpu.memory_space<vmem>>, %arg6: memref<16x128xf32, #tpu.memory_space<vmem>>) attributes {dimension_semantics = [#tpu.dimension_semantics<parallel>], iteration_bounds = array<i64: 1>, scalar_prefetch = 0 : i64, scratch_operands = 0 : i64, tpu.core_type = #tpu.core_type<tc>, window_params = [{transform_indices = @transform_0, window_bounds = array<i64: 16, 128>}, {pipeline_mode = #tpu.pipeline_mode<synchronous>, transform_indices = @transform_1, window_bounds = array<i64: 128, 128>}, {pipeline_mode = #tpu.pipeline_mode<synchronous>, transform_indices = @transform_2, window_bounds = array<i64: 1, 128>}, {pipeline_mode = #tpu.pipeline_mode<synchronous>, transform_indices = @transform_3, window_bounds = array<i64: 128, 128>}, {pipeline_mode = #tpu.pipeline_mode<synchronous>, transform_indices = @transform_4, window_bounds = array<i64: 1, 128>}, {transform_indices = @transform_5, window_bounds = array<i64: 16, 128>}]} {
    %c0 = arith.constant 0 : index
    %c0_0 = arith.constant 0 : index
    %0 = vector.load %arg1[%c0, %c0_0] : memref<16x128xbf16, #tpu.memory_space<vmem>>, vector<16x128xbf16>
    %c0_1 = arith.constant 0 : index
    %c0_2 = arith.constant 0 : index
    %1 = vector.load %arg2[%c0_1, %c0_2] : memref<128x128xbf16, #tpu.memory_space<vmem>>, vector<128x128xbf16>
    %c0_3 = arith.constant 0 : index
    %c0_4 = arith.constant 0 : index
    %2 = vector.load %arg3[%c0_3, %c0_4] : memref<1x128xf32, #tpu.memory_space<vmem>>, vector<1x128xf32>
    %cst = arith.constant dense<0.000000e+00> : vector<16x128xf32>
    %3 = tpu.matmul %0, %1, %cst {dimension_numbers = #tpu.dot_dimension_numbers<[1], [0], [0], [1], [0, 0, 1, 1], [], []>} : vector<16x128xbf16>, vector<128x128xbf16>, vector<16x128xf32> -> vector<16x128xf32>
    %4 = vector.broadcast %2 : vector<1x128xf32> to vector<16x128xf32>
    %5 = arith.addf %3, %4 : vector<16x128xf32>
    %cst_5 = arith.constant 0.000000e+00 : f32
    %6 = vector.broadcast %cst_5 : f32 to vector<16x128xf32>
    %7 = arith.maximumf %5, %6 : vector<16x128xf32>
    %8 = arith.truncf %7 : vector<16x128xf32> to vector<16x128xbf16>
    %c0_6 = arith.constant 0 : index
    %c0_7 = arith.constant 0 : index
    %9 = vector.load %arg4[%c0_6, %c0_7] : memref<128x128xbf16, #tpu.memory_space<vmem>>, vector<128x128xbf16>
    %c0_8 = arith.constant 0 : index
    %c0_9 = arith.constant 0 : index
    %10 = vector.load %arg5[%c0_8, %c0_9] : memref<1x128xf32, #tpu.memory_space<vmem>>, vector<1x128xf32>
    %cst_10 = arith.constant dense<0.000000e+00> : vector<16x128xf32>
    %11 = tpu.matmul %8, %9, %cst_10 {dimension_numbers = #tpu.dot_dimension_numbers<[1], [0], [0], [1], [0, 0, 1, 1], [], []>} : vector<16x128xbf16>, vector<128x128xbf16>, vector<16x128xf32> -> vector<16x128xf32>
    %12 = vector.broadcast %10 : vector<1x128xf32> to vector<16x128xf32>
    %13 = arith.addf %11, %12 : vector<16x128xf32>
    %cst_11 = arith.constant 0.000000e+00 : f32
    %14 = vector.broadcast %cst_11 : f32 to vector<16x128xf32>
    %15 = arith.maximumf %13, %14 : vector<16x128xf32>
    %c0_12 = arith.constant 0 : index
    %c0_13 = arith.constant 0 : index
    %16 = vector.load %arg6[%c0_12, %c0_13] : memref<16x128xf32, #tpu.memory_space<vmem>>, vector<16x128xf32>
    tpu.vector_store %arg6[%c0_12, %c0_13], %15 {strides = array<i32>} : memref<16x128xf32, #tpu.memory_space<vmem>>, vector<16x128xf32>,
    return
  }
  func.func @transform_0(%arg0: i32) -> (i32, i32) {
    %c0_i32 = arith.constant 0 : i32
    %c0_i32_0 = arith.constant 0 : i32
    return %arg0, %c0_i32 : i32, i32
  }
  func.func @transform_1(%arg0: i32) -> (i32, i32) {
    %c0_i32 = arith.constant 0 : i32
    %c0_i32_0 = arith.constant 0 : i32
    %c0_i32_1 = arith.constant 0 : i32
    return %c0_i32, %c0_i32_0 : i32, i32
  }
  func.func @transform_2(%arg0: i32) -> (i32, i32) {
    %c0_i32 = arith.constant 0 : i32
    %c0_i32_0 = arith.constant 0 : i32
    %c0_i32_1 = arith.constant 0 : i32
    return %c0_i32, %c0_i32_0 : i32, i32
  }
  func.func @transform_3(%arg0: i32) -> (i32, i32) {
    %c0_i32 = arith.constant 0 : i32
    %c0_i32_0 = arith.constant 0 : i32
    %c0_i32_1 = arith.constant 0 : i32
    return %c0_i32, %c0_i32_0 : i32, i32
  }
  func.func @transform_4(%arg0: i32) -> (i32, i32) {
    %c0_i32 = arith.constant 0 : i32
    %c0_i32_0 = arith.constant 0 : i32
    %c0_i32_1 = arith.constant 0 : i32
    return %c0_i32, %c0_i32_0 : i32, i32
  }
  func.func @transform_5(%arg0: i32) -> (i32, i32) {
    %c0_i32 = arith.constant 0 : i32
    %c0_i32_0 = arith.constant 0 : i32
    return %arg0, %c0_i32 : i32, i32
  }
}

</mosaic_0001>

<bundles_post_ra>
// kernel: torch_network_forward.1
= control target key start
LH: loop header
LB: loop body
LE: loop exit
PB: predicated region body
PF: predicated region fallthrough
CT: control target
= control target key end

     0   :  { %10 = vsyncpa [#allocation3], 0  ;;  %s435_s0 = inlined_call_operand.vmem [shape: bf16[16,128], index: 0, kind: input, shape index: {}]   ;;  %s436_s1 = inlined_call_operand.hbm [shape: bf16[128,128], index: 1, kind: input, shape index: {}]   ;;  %s437_s2 = inlined_call_operand.vmem [shape: f32[1,128], index: 2, kind: input, shape index: {}]   ;;  %s438_s3 = inlined_call_operand.hbm [shape: bf16[128,128], index: 3, kind: input, shape index: {}]   ;;  %s439_s4 = inlined_call_operand.vmem [shape: f32[1,128], index: 4, kind: input, shape index: {}]   ;;  %s440_s5 = inlined_call_operand.vmem [shape: f32[16,128], index: 5, kind: output, shape index: {}]  }
   0x1   :  { %s18_s20 = sshll.u32 %s436_s1, 4  ;;  %s19_s20 = int_to_ptr.hbm [resolvable:$true] %s18_s20 }
   0x2   :  { %11 = vsyncpa [#allocation5], 0  ;;  %s380_s21 = smov [#allocation2]   ;;  %s33_s25 = sshll.u32 %s438_s3, 4  ;;  %s34_s25 = int_to_ptr.hbm [resolvable:$true] %s33_s25 }
   0x3   :  { %s20_s22 = sshll.u32 %s380_s21, 4  ;;  %s381_s26 = smov 64   ;;  %s21_s22 = int_to_ptr.vmem [resolvable:$true] %s20_s22 }
   0x4   :  { %s382_s27 = smov 4   ;;  %s383_s28 = smov [#allocation4]  }
   0x5   :  { %26 = dma.hbm_to_vmem [thread:$0]  %s19_s20, 1024, %s21_s22, [#allocation3], %s381_s26, %s381_s26, %s382_s27  }
   0x6   :  { %s35_s29 = sshll.u32 %s383_s28, 4  ;;  %s36_s29 = int_to_ptr.vmem [resolvable:$true] %s35_s29 }
   0x7   :  { %41 = dma.hbm_to_vmem [thread:$0]  %s34_s25, 1024, %s36_s29, [#allocation5], %s381_s26, %s381_s26, %s382_s27  }
   0x8   :  { %376 = dma.done.wait [#allocation3], 1024  }
   0x9   :  { %377 = vsyncadd [#allocation3], 4294966272 }
   0xa   :  { %378 = dma.done.wait [#allocation5], 1024  }
   0xb   :  { %379 = vsyncadd [#allocation5], 4294966272  ;;  %v313_v0 = vld [vmem:[#allocation2 + $0x38] sm:$0xff]  ;;  %v312_v1 = vld [vmem:[#allocation2 + $0x30] sm:$0xff] }
   0xc   :  { %128 = vmatpush.bf16.msra.mxu0 %v313_v0  ;;  %v321_v2 = vld [vmem:[#allocation4 + $0x38] sm:$0xff]  ;;  %v320_v3 = vld [vmem:[#allocation4 + $0x30] sm:$0xff]  ;;  %v311_v4 = vld [vmem:[#allocation2 + $0x28] sm:$0xff] }
   0xd   :  { %213 = vmatpush.bf16.msra.mxu1 %v321_v2  ;;  %v319_v5 = vld [vmem:[#allocation4 + $0x28] sm:$0xff]  ;;  %v310_v6 = vld [vmem:[#allocation2 + $0x20] sm:$0xff]  ;;  %v309_v8 = vld [vmem:[#allocation2 + $0x18] sm:$0xff] }
   0xe   :  { %v318_v7 = vld [vmem:[#allocation4 + $0x20] sm:$0xff]  ;;  %v308_v9 = vld [vmem:[#allocation2 + $0x10] sm:$0xff]  ;;  %v307_v10 = vld [vmem:[#allocation2 + $0x8] sm:$0xff] }
   0xf   :  { %v306_v11 = vld [vmem:[#allocation2] sm:$0xff]  ;;  %v317_v13 = vld [vmem:[#allocation4 + $0x18] sm:$0xff]  ;;  %v316_v14 = vld [vmem:[#allocation4 + $0x10] sm:$0xff] }
  0x10   :  { %129 = vmatpush.bf16.msra.mxu0 %v312_v1  ;;  %v305_v12 = vld [vmem:[%s435_s0] sm:$0xff]  ;;  %v315_v15 = vld [vmem:[#allocation4 + $0x8] sm:$0xff] }
  0x11   :  { %214 = vmatpush.bf16.msra.mxu1 %v320_v3  ;;  %v314_v16 = vld [vmem:[#allocation4] sm:$0xff] }
  0x12   :  { %v326_v18 = vld [vmem:[%s437_s2] ss:$0 sm:$0xff] }
  0x13   :  { %v327_v25 = vld [vmem:[%s439_s4] ss:$0 sm:$0xff] }
  0x14   :  { %130 = vmatpush.bf16.msra.mxu0 %v311_v4 }
  0x15   :  { %215 = vmatpush.bf16.msra.mxu1 %v319_v5 }
  0x18   :  { %131 = vmatpush.bf16.msra.mxu0 %v310_v6 }
  0x19   :  { %216 = vmatpush.bf16.msra.mxu1 %v318_v7 }
  0x1c   :  { %132 = vmatpush.bf16.msra.mxu0 %v309_v8 }
  0x1d   :  { %217 = vmatpush.bf16.msra.mxu1 %v317_v13 }
  0x20   :  { %133 = vmatpush.bf16.msra.mxu0 %v308_v9 }
  0x21   :  { %218 = vmatpush.bf16.msra.mxu1 %v316_v14 }
  0x24   :  { %134 = vmatpush.bf16.msra.mxu0 %v307_v10 }
  0x25   :  { %219 = vmatpush.bf16.msra.mxu1 %v315_v15 }
  0x28   :  { %135 = vmatpush.bf16.msra.mxu0 %v306_v11 }
  0x29   :  { %220 = vmatpush.bf16.msra.mxu1 %v314_v16 }
  0x2b   :  { %136 = vmatmul.bf16.vlgmr.msra.gmra.mxu0 %v305_v12 }
  0xa8   :  { %v137_v17 = vpop.f32.mrf.mxu0 }
  0xa9   :  { %v138_v19 = vadd.f32 %v326_v18, %v137_v17 }
  0xab   :  { %v142_v22 = vmax.f32 %v138_v19, 0.0 }
  0xb0   :  { %v139_v20 = vpop.f32.mrf.mxu0 }
  0xb1   :  { %v140_v21 = vadd.f32 %v326_v18, %v139_v20 }
  0xb3   :  { %v143_v23 = vmax.f32 %v140_v21, 0.0 }
  0xb5   :  { %v144_v24 = vpack.c.bf16 %v143_v23, %v142_v22 }
  0xb7   :  { %221 = vmatmul.bf16.vlgmr.msra.gmra.mxu1 %v144_v24 }
 0x134   :  { %v222_v26 = vpop.f32.mrf.mxu1 }
 0x135   :  { %v223_v27 = vadd.f32 %v327_v25, %v222_v26 }
 0x137   :  { %v227_v28 = vmax.f32 %v223_v27, 0.0 }
 0x139   :  { %229 = vst [vmem:[%s440_s5] sm:$0xff] %v227_v28 }
 0x13c   :  { %v224_v29 = vpop.f32.mrf.mxu1 }
 0x13d   :  { %v225_v30 = vadd.f32 %v327_v25, %v224_v29 }
 0x13f   :  { %v228_v31 = vmax.f32 %v225_v30, 0.0 }
 0x141   :  { %230 = vst [vmem:[%s440_s5 + $0x8] sm:$0xff] %v228_v31 }
 0x142   :  { %235 = vsyncpa [#allocation3], 1 }
 0x143   :  { %236 = vsyncpa [#allocation5], 1 }

</bundles_post_ra>
